<compile_context>
chip_gen: v5e
topology: v5e:2x2
jax: 0.10.0
libtpu: 0.0.40
codegen_flags: <defaults>
</compile_context>

<pallas_src>
import jax
import jax.numpy as jnp
from jax.experimental import pallas as pl
from jax.experimental.pallas import tpu as pltpu


def _round_up(x, m):
    return ((x + m - 1) // m) * m


def reward_kernel(sa_ref, w1_ref, b1_ref, w2_ref, b2_ref, w3_ref, b3_ref,
                  w4_ref, b4_ref, out_ref):
    """Batch-on-lanes MLP: activations are (features, TB)."""
    x = sa_ref[...]                                            # (S+A, TB)

    h1 = jnp.dot(w1_ref[...], x, preferred_element_type=jnp.float32)
    h1 = jnp.maximum(h1 + b1_ref[...], 0.0)                    # (H, TB)

    h2 = jnp.dot(w2_ref[...], h1, preferred_element_type=jnp.float32)
    h2 = jnp.maximum(h2 + b2_ref[...], 0.0)                    # (H, TB)

    h3 = jnp.dot(w3_ref[...], h2, preferred_element_type=jnp.float32)
    h3 = jnp.maximum(h3 + b3_ref[...], 0.0)                    # (H, TB)

    # Final layer (out_features == 1): weighted sublane reduce on VPU/XLU
    # instead of an M=1 MXU matmul.  w4_ref is an (H, 1) column.
    out_ref[...] = (jnp.sum(h3 * w4_ref[...], axis=0, keepdims=True)
                    + b4_ref[...])                             # (1, TB)


def reward_forward(state, action, params, *, max_tile=2048):
    """state: (B, S), action: (B, A) -> reward: (B, 1), float32.

    Params are in PyTorch layout: weights (out_features, in_features),
    biases (out_features,).
    """
    w1, b1, w2, b2, w3, b3, w4, b4 = params
    state = state.astype(jnp.float32)
    action = action.astype(jnp.float32)
    B, S = state.shape
    A = action.shape[1]
    H = w1.shape[0]

    # "Batch on lanes": the kernel consumes x^T of shape (S+A, B).  The
    # concat+transpose fuses into one tiny XLA op and gives a single fused
    # K = S+A layer-1 matmul inside the kernel.
    sa_t = jnp.concatenate([state, action], axis=1).T          # (S+A, B)

    # Biases (and the final weight) as columns so they broadcast along the
    # lane (batch) axis inside the kernel.
    b1c = b1.reshape(H, 1)
    b2c = b2.reshape(H, 1)
    b3c = b3.reshape(H, 1)
    w4c = w4.reshape(H, 1)                                     # (1,H) -> (H,1)
    b4c = b4.reshape(1, 1)

    # Batch tile: lane-aligned, large enough to amortize per-step overhead.
    TB = min(max_tile, _round_up(B, 128))
    # Keep >= 2 grid steps for largish batches so the "parallel" batch axis
    # can shard across v7x's two TensorCores (no effect on v5e/v6e).
    if B > 256 and _round_up(B, TB) // TB < 2:
        TB = _round_up(-(-B // 2), 128)
    pB = _round_up(B, TB)
    if pB != B:
        sa_t = jnp.pad(sa_t, ((0, 0), (0, pB - B)))

    # Weights/biases: block == full array, constant index_map -> VMEM
    # resident across the whole grid (DMA'd once per call).
    def resident(arr):
        return pl.BlockSpec(arr.shape, lambda i: (0, 0))

    out = pl.pallas_call(
        reward_kernel,
        out_shape=jax.ShapeDtypeStruct((1, pB), jnp.float32),
        grid=(pB // TB,),
        in_specs=[
            pl.BlockSpec((S + A, TB), lambda i: (0, i)),       # activations
            resident(w1), resident(b1c),
            resident(w2), resident(b2c),
            resident(w3), resident(b3c),
            resident(w4c), resident(b4c),
        ],
        out_specs=pl.BlockSpec((1, TB), lambda i: (0, i)),     # lane-dense out
        compiler_params=pltpu.CompilerParams(
            dimension_semantics=("parallel",)),
    )(sa_t, w1, b1c, w2, b2c, w3, b3c, w4c, b4c)

    return out[0, :B].reshape(B, 1)


def init_params(key, state_dim, action_dim, hidden_dim):
    """Deterministic synthetic init, same layer shapes as the nn.Module.
    Weights in PyTorch layout: (out_features, in_features)."""
    dims = [
        (hidden_dim, state_dim + action_dim),  # l1
        (hidden_dim, hidden_dim),              # l2
        (hidden_dim, hidden_dim),              # l3
        (1, hidden_dim),                       # l4
    ]
    params = []
    for (fan_out, fan_in) in dims:
        key, kw, kb = jax.random.split(key, 3)
        bound = float(fan_in) ** -0.5
        w = jax.random.uniform(kw, (fan_out, fan_in), jnp.float32,
                               -bound, bound)
        b = jax.random.uniform(kb, (fan_out,), jnp.float32, -bound, bound)
        params += [w, b]
    return tuple(params)


def reference_forward(state, action, params):
    w1, b1, w2, b2, w3, b3, w4, b4 = params
    sa = jnp.concatenate([state, action], axis=1)
    h = jnp.maximum(sa @ w1.T + b1, 0.0)
    h = jnp.maximum(h @ w2.T + b2, 0.0)
    h = jnp.maximum(h @ w3.T + b3, 0.0)
    return h @ w4.T + b4


if __name__ == "__main__":
    state_dim, action_dim, hidden_dim = 12, 4, 32

    key = jax.random.PRNGKey(0)
    key, ks, ka, kp = jax.random.split(key, 4)
    params = init_params(kp, state_dim, action_dim, hidden_dim)

    # Small batch (single grid step, heavy lane padding).
    batch = 8
    state = jax.random.normal(ks, (batch, state_dim), jnp.float32)
    action = jax.random.normal(ka, (batch, action_dim), jnp.float32)
    out = jax.block_until_ready(reward_forward(state, action, params))
    ref = reference_forward(state, action, params)
    assert out.shape == (batch, 1)
    assert jnp.allclose(out, ref, atol=1e-5, rtol=1e-5)

    # Non-multiple-of-128 batch (exercises padding + slicing).
    key, ks2, ka2 = jax.random.split(key, 3)
    batch2 = 20
    state2 = jax.random.normal(ks2, (batch2, state_dim), jnp.float32)
    action2 = jax.random.normal(ka2, (batch2, action_dim), jnp.float32)
    out2 = jax.block_until_ready(reward_forward(state2, action2, params))
    ref2 = reference_forward(state2, action2, params)
    assert out2.shape == (batch2, 1)
    assert jnp.allclose(out2, ref2, atol=1e-5, rtol=1e-5)

    # Larger batch (exercises multi-step grid + the >=2-step v7x heuristic).
    key, ks3, ka3 = jax.random.split(key, 3)
    batch3 = 300
    state3 = jax.random.normal(ks3, (batch3, state_dim), jnp.float32)
    action3 = jax.random.normal(ka3, (batch3, action_dim), jnp.float32)
    out3 = jax.block_until_ready(reward_forward(state3, action3, params))
    ref3 = reference_forward(state3, action3, params)
    assert out3.shape == (batch3, 1)
    assert jnp.allclose(out3, ref3, atol=1e-5, rtol=1e-5)

    print("KERNEL_OK")
</pallas_src>

<mosaic_0001>
module attributes {stable_mosaic.version = 11 : i64} {
  func.func @reward_kernel(%arg0: i32, %arg1: memref<16x128xf32, #tpu.memory_space<vmem>>, %arg2: memref<32x16xf32, #tpu.memory_space<vmem>>, %arg3: memref<32x1xf32, #tpu.memory_space<vmem>>, %arg4: memref<32x32xf32, #tpu.memory_space<vmem>>, %arg5: memref<32x1xf32, #tpu.memory_space<vmem>>, %arg6: memref<32x32xf32, #tpu.memory_space<vmem>>, %arg7: memref<32x1xf32, #tpu.memory_space<vmem>>, %arg8: memref<32x1xf32, #tpu.memory_space<vmem>>, %arg9: memref<1x1xf32, #tpu.memory_space<vmem>>, %arg10: memref<1x128xf32, #tpu.memory_space<vmem>>) attributes {dimension_semantics = [#tpu.dimension_semantics<parallel>], iteration_bounds = array<i64: 1>, scalar_prefetch = 0 : i64, scratch_operands = 0 : i64, tpu.core_type = #tpu.core_type<tc>, window_params = [{transform_indices = @transform_0, window_bounds = array<i64: 16, 128>}, {pipeline_mode = #tpu.pipeline_mode<synchronous>, transform_indices = @transform_1, window_bounds = array<i64: 32, 16>}, {pipeline_mode = #tpu.pipeline_mode<synchronous>, transform_indices = @transform_2, window_bounds = array<i64: 32, 1>}, {pipeline_mode = #tpu.pipeline_mode<synchronous>, transform_indices = @transform_3, window_bounds = array<i64: 32, 32>}, {pipeline_mode = #tpu.pipeline_mode<synchronous>, transform_indices = @transform_4, window_bounds = array<i64: 32, 1>}, {pipeline_mode = #tpu.pipeline_mode<synchronous>, transform_indices = @transform_5, window_bounds = array<i64: 32, 32>}, {pipeline_mode = #tpu.pipeline_mode<synchronous>, transform_indices = @transform_6, window_bounds = array<i64: 32, 1>}, {pipeline_mode = #tpu.pipeline_mode<synchronous>, transform_indices = @transform_7, window_bounds = array<i64: 32, 1>}, {pipeline_mode = #tpu.pipeline_mode<synchronous>, transform_indices = @transform_8, window_bounds = array<i64: 1, 1>}, {transform_indices = @transform_9, window_bounds = array<i64: 1, 128>}]} {
    %c0 = arith.constant 0 : index
    %c0_0 = arith.constant 0 : index
    %0 = vector.load %arg1[%c0, %c0_0] : memref<16x128xf32, #tpu.memory_space<vmem>>, vector<16x128xf32>
    %c0_1 = arith.constant 0 : index
    %c0_2 = arith.constant 0 : index
    %1 = vector.load %arg2[%c0_1, %c0_2] : memref<32x16xf32, #tpu.memory_space<vmem>>, vector<32x16xf32>
    %cst = arith.constant dense<0.000000e+00> : vector<32x128xf32>
    %2 = tpu.matmul %1, %0, %cst {dimension_numbers = #tpu.dot_dimension_numbers<[1], [0], [0], [1], [0, 0, 1, 1], [], []>} : vector<32x16xf32>, vector<16x128xf32>, vector<32x128xf32> -> vector<32x128xf32>
    %c0_3 = arith.constant 0 : index
    %c0_4 = arith.constant 0 : index
    %3 = vector.load %arg3[%c0_3, %c0_4] : memref<32x1xf32, #tpu.memory_space<vmem>>, vector<32x1xf32>
    %4 = vector.broadcast %3 : vector<32x1xf32> to vector<32x128xf32>
    %5 = arith.addf %2, %4 : vector<32x128xf32>
    %cst_5 = arith.constant 0.000000e+00 : f32
    %6 = vector.broadcast %cst_5 : f32 to vector<32x128xf32>
    %7 = arith.maximumf %5, %6 : vector<32x128xf32>
    %c0_6 = arith.constant 0 : index
    %c0_7 = arith.constant 0 : index
    %8 = vector.load %arg4[%c0_6, %c0_7] : memref<32x32xf32, #tpu.memory_space<vmem>>, vector<32x32xf32>
    %cst_8 = arith.constant dense<0.000000e+00> : vector<32x128xf32>
    %9 = tpu.matmul %8, %7, %cst_8 {dimension_numbers = #tpu.dot_dimension_numbers<[1], [0], [0], [1], [0, 0, 1, 1], [], []>} : vector<32x32xf32>, vector<32x128xf32>, vector<32x128xf32> -> vector<32x128xf32>
    %c0_9 = arith.constant 0 : index
    %c0_10 = arith.constant 0 : index
    %10 = vector.load %arg5[%c0_9, %c0_10] : memref<32x1xf32, #tpu.memory_space<vmem>>, vector<32x1xf32>
    %11 = vector.broadcast %10 : vector<32x1xf32> to vector<32x128xf32>
    %12 = arith.addf %9, %11 : vector<32x128xf32>
    %cst_11 = arith.constant 0.000000e+00 : f32
    %13 = vector.broadcast %cst_11 : f32 to vector<32x128xf32>
    %14 = arith.maximumf %12, %13 : vector<32x128xf32>
    %c0_12 = arith.constant 0 : index
    %c0_13 = arith.constant 0 : index
    %15 = vector.load %arg6[%c0_12, %c0_13] : memref<32x32xf32, #tpu.memory_space<vmem>>, vector<32x32xf32>
    %cst_14 = arith.constant dense<0.000000e+00> : vector<32x128xf32>
    %16 = tpu.matmul %15, %14, %cst_14 {dimension_numbers = #tpu.dot_dimension_numbers<[1], [0], [0], [1], [0, 0, 1, 1], [], []>} : vector<32x32xf32>, vector<32x128xf32>, vector<32x128xf32> -> vector<32x128xf32>
    %c0_15 = arith.constant 0 : index
    %c0_16 = arith.constant 0 : index
    %17 = vector.load %arg7[%c0_15, %c0_16] : memref<32x1xf32, #tpu.memory_space<vmem>>, vector<32x1xf32>
    %18 = vector.broadcast %17 : vector<32x1xf32> to vector<32x128xf32>
    %19 = arith.addf %16, %18 : vector<32x128xf32>
    %cst_17 = arith.constant 0.000000e+00 : f32
    %20 = vector.broadcast %cst_17 : f32 to vector<32x128xf32>
    %21 = arith.maximumf %19, %20 : vector<32x128xf32>
    %c0_18 = arith.constant 0 : index
    %c0_19 = arith.constant 0 : index
    %22 = vector.load %arg8[%c0_18, %c0_19] : memref<32x1xf32, #tpu.memory_space<vmem>>, vector<32x1xf32>
    %23 = vector.broadcast %22 : vector<32x1xf32> to vector<32x128xf32>
    %24 = arith.mulf %21, %23 : vector<32x128xf32>
    %cst_20 = arith.constant dense<0.000000e+00> : vector<128xf32>
    %25 = vector.multi_reduction <add>, %24, %cst_20 [0] : vector<32x128xf32> to vector<128xf32>
    %26 = vector.shape_cast %25 : vector<128xf32> to vector<1x128xf32>
    %c0_21 = arith.constant 0 : index
    %c0_22 = arith.constant 0 : index
    %27 = vector.load %arg9[%c0_21, %c0_22] : memref<1x1xf32, #tpu.memory_space<vmem>>, vector<1x1xf32>
    %28 = vector.broadcast %27 : vector<1x1xf32> to vector<1x128xf32>
    %29 = arith.addf %26, %28 : vector<1x128xf32>
    %c0_23 = arith.constant 0 : index
    %c0_24 = arith.constant 0 : index
    %30 = vector.load %arg10[%c0_23, %c0_24] : memref<1x128xf32, #tpu.memory_space<vmem>>, vector<1x128xf32>
    tpu.vector_store %arg10[%c0_23, %c0_24], %29 {strides = array<i32>} : memref<1x128xf32, #tpu.memory_space<vmem>>, vector<1x128xf32>,
    return
  }
  func.func @transform_0(%arg0: i32) -> (i32, i32) {
    %c0_i32 = arith.constant 0 : i32
    %c0_i32_0 = arith.constant 0 : i32
    return %c0_i32, %arg0 : i32, i32
  }
  func.func @transform_1(%arg0: i32) -> (i32, i32) {
    %c0_i32 = arith.constant 0 : i32
    %c0_i32_0 = arith.constant 0 : i32
    %c0_i32_1 = arith.constant 0 : i32
    return %c0_i32, %c0_i32_0 : i32, i32
  }
  func.func @transform_2(%arg0: i32) -> (i32, i32) {
    %c0_i32 = arith.constant 0 : i32
    %c0_i32_0 = arith.constant 0 : i32
    %c0_i32_1 = arith.constant 0 : i32
    return %c0_i32, %c0_i32_0 : i32, i32
  }
  func.func @transform_3(%arg0: i32) -> (i32, i32) {
    %c0_i32 = arith.constant 0 : i32
    %c0_i32_0 = arith.constant 0 : i32
    %c0_i32_1 = arith.constant 0 : i32
    return %c0_i32, %c0_i32_0 : i32, i32
  }
  func.func @transform_4(%arg0: i32) -> (i32, i32) {
    %c0_i32 = arith.constant 0 : i32
    %c0_i32_0 = arith.constant 0 : i32
    %c0_i32_1 = arith.constant 0 : i32
    return %c0_i32, %c0_i32_0 : i32, i32
  }
  func.func @transform_5(%arg0: i32) -> (i32, i32) {
    %c0_i32 = arith.constant 0 : i32
    %c0_i32_0 = arith.constant 0 : i32
    %c0_i32_1 = arith.constant 0 : i32
    return %c0_i32, %c0_i32_0 : i32, i32
  }
  func.func @transform_6(%arg0: i32) -> (i32, i32) {
    %c0_i32 = arith.constant 0 : i32
    %c0_i32_0 = arith.constant 0 : i32
    %c0_i32_1 = arith.constant 0 : i32
    return %c0_i32, %c0_i32_0 : i32, i32
  }
  func.func @transform_7(%arg0: i32) -> (i32, i32) {
    %c0_i32 = arith.constant 0 : i32
    %c0_i32_0 = arith.constant 0 : i32
    %c0_i32_1 = arith.constant 0 : i32
    return %c0_i32, %c0_i32_0 : i32, i32
  }
  func.func @transform_8(%arg0: i32) -> (i32, i32) {
    %c0_i32 = arith.constant 0 : i32
    %c0_i32_0 = arith.constant 0 : i32
    %c0_i32_1 = arith.constant 0 : i32
    return %c0_i32, %c0_i32_0 : i32, i32
  }
  func.func @transform_9(%arg0: i32) -> (i32, i32) {
    %c0_i32 = arith.constant 0 : i32
    %c0_i32_0 = arith.constant 0 : i32
    return %c0_i32, %arg0 : i32, i32
  }
}

</mosaic_0001>

<bundles_post_ra>
// kernel: tpu_custom_call.1
= control target key start
LH: loop header
LB: loop body
LE: loop exit
PB: predicated region body
PF: predicated region fallthrough
CT: control target
= control target key end

     0   :  { %s531_s0 = inlined_call_operand.vmem [shape: f32[16,128], index: 0, kind: input, shape index: {}]   ;;  %s532_s1 = inlined_call_operand.vmem [shape: f32[32,16], index: 1, kind: input, shape index: {}]   ;;  %s533_s2 = inlined_call_operand.vmem [shape: f32[32,1], index: 2, kind: input, shape index: {}]   ;;  %s534_s3 = inlined_call_operand.vmem [shape: f32[32,32], index: 3, kind: input, shape index: {}]   ;;  %s535_s4 = inlined_call_operand.vmem [shape: f32[32,1], index: 4, kind: input, shape index: {}]   ;;  %s536_s5 = inlined_call_operand.vmem [shape: f32[32,32], index: 5, kind: input, shape index: {}]   ;;  %s537_s6 = inlined_call_operand.vmem [shape: f32[32,1], index: 6, kind: input, shape index: {}]   ;;  %s538_s7 = inlined_call_operand.vmem [shape: f32[32,1], index: 7, kind: input, shape index: {}]   ;;  %s539_s8 = inlined_call_operand.<no memory space> [shape: f32[1,1], index: 8, kind: input, shape index: {}]   ;;  %s540_s9 = inlined_call_operand.hbm [shape: f32[1,128], index: 9, kind: output, shape index: {}]  }
   0x1   :  { %v14_v0 = vstv %s539_s8 }
   0x2   :  { %15 = vst [vmem:[#allocation2] sm:$0x1] %v14_v0 }
   0x3   :  { %v36_v1 = vld [vmem:[%s531_s0 + $0x8] sm:$0xff]  ;;  %v44_v2 = vld [vmem:[%s533_s2 + $0x18] sm:$0xff]  ;;  %v371_v4 = vmov 0   ;;  %v35_v5 = vld [vmem:[%s531_s0] sm:$0xff]  ;;  %vm65_vm0 = vcmask 130048  }
   0x4   :  { %v42_v3 = vld [vmem:[%s533_s2 + $0x8] sm:$0xff]  ;;  %343 = vset.pattern.permute.xlu1 %v371_v4  ;;  %342 = vset.pattern.permute.xlu0 %v371_v4  ;;  %v37_v6 = vld [vmem:[%s532_s1] sm:$0xff] }
   0x5   :  { %92 = vmatpush.msra.mxu0 %v36_v1  ;;  %62 = vperm.xlu0 %342, %v44_v2  }
   0x6   :  { %52 = vperm.xlu1 %343, %v42_v3   ;;  %344 = vset.pattern.permute.xlu2 %v371_v4 }
   0x7   :  { %93 = vmatpush.msra.mxu0 %v35_v5 }
   0x8   :  { %320 = vmatmul.msk.f32.vlgmr.msra.gmra.mxu0 %vm65_vm0, %v37_v6 }
   0x9   :  { %16 = vsyncpa [#allocation4], 0  ;;  %v43_v7 = vld [vmem:[%s533_s2 + $0x10] sm:$0xff]  ;;  %v41_v8 = vld [vmem:[%s533_s2] sm:$0xff]  ;;  %vm139_vm1 = vcmask 261120  }
   0xa   :  { %v38_v9 = vld [vmem:[%s532_s1 + $0x8] sm:$0xff]  ;;  %v115_v11 = vld [vmem:[%s535_s4] sm:$0xff]  ;;  %v39_v12 = vld [vmem:[%s532_s1 + $0x10] sm:$0xff] }
   0xb   :  { %v116_v10 = vld [vmem:[%s535_s4 + $0x8] sm:$0xff]  ;;  %v191_v14 = vld [vmem:[%s537_s6 + $0x10] sm:$0xff]  ;;  %v40_v15 = vld [vmem:[%s532_s1 + $0x18] sm:$0xff]  ;;  %s311_s1 = sshll.u32 %s540_s9, 4  ;;  %s312_s1 = int_to_ptr.hbm [resolvable:$true] %s311_s1 }
   0xc   :  { %v190_v13 = vld [vmem:[%s537_s6 + $0x8] sm:$0xff]  ;;  %v258_v16 = vld [vmem:[%s538_s7] sm:$0xff]  ;;  %v261_v18 = vld [vmem:[%s538_s7 + $0x18] sm:$0xff] }
   0xd   :  { %57 = vperm.xlu0 %342, %v43_v7   ;;  %v259_v17 = vld [vmem:[%s538_s7 + $0x8] sm:$0xff]  ;;  %v295_v19 = vld [vmem:[#allocation2] sm:$0x1]  ;;  %v118_v25 = vld [vmem:[%s535_s4 + $0x18] sm:$0xff] }
   0xe   :  { %47 = vperm.xlu1 %343, %v41_v8   ;;  %136 = vperm.xlu2 %344, %v118_v25   ;;  %v117_v32 = vld [vmem:[%s535_s4 + $0x10] sm:$0xff]  ;;  %v111_v38 = vld [vmem:[%s534_s3] sm:$0xff]  ;;  %v112_v39 = vld [vmem:[%s534_s3 + $0x8] sm:$0xff] }
   0xf   :  { %v189_v40 = vld [vmem:[%s537_s6] sm:$0xff]  ;;  %v113_v41 = vld [vmem:[%s534_s3 + $0x10] sm:$0xff]  ;;  %v192_v42 = vld [vmem:[%s537_s6 + $0x18] sm:$0xff] }
  0x10   :  { %321 = vmatmul.msk.f32.gmra.mxu0 %vm65_vm0, %v38_v9  ;;  %v114_v43 = vld [vmem:[%s534_s3 + $0x18] sm:$0xff]  ;;  %v260_v44 = vld [vmem:[%s538_s7 + $0x10] sm:$0xff]  ;;  %v185_v61 = vld [vmem:[%s536_s5] sm:$0xff] }
  0x11   :  { %v186_v62 = vld [vmem:[%s536_s5 + $0x8] sm:$0xff]  ;;  %v187_v63 = vld [vmem:[%s536_s5 + $0x10] sm:$0xff]  ;;  %v188_v0 = vld [vmem:[%s536_s5 + $0x18] sm:$0xff]  ;;  %s372_s5 = smov [#allocation3]  }
  0x12   :  { %s309_s18 = sshll.u32 %s372_s5, 4  ;;  %s310_s18 = int_to_ptr.vmem [resolvable:$true] %s309_s18 }
  0x15   :  { %126 = vperm.xlu0 %342, %v116_v10  }
  0x16   :  { %121 = vperm.xlu1 %343, %v115_v11   ;;  %131 = vperm.xlu2 %344, %v117_v32  }
  0x18   :  { %322 = vmatmul.msk.f32.gmra.mxu0 %vm65_vm0, %v39_v12 }
  0x1d   :  { %200 = vperm.xlu0 %342, %v190_v13  }
  0x1e   :  { %205 = vperm.xlu1 %343, %v191_v14   ;;  %195 = vperm.xlu2 %344, %v189_v40  }
  0x20   :  { %323 = vmatmul.msk.f32.gmra.mxu0 %vm65_vm0, %v40_v15 }
  0x25   :  { %264 = vperm.xlu0 %342, %v258_v16  }
  0x26   :  { %269 = vperm.xlu1 %343, %v259_v17   ;;  %210 = vperm.xlu2 %344, %v192_v42  }
  0x2d   :  { %279 = vperm.xlu0 %342, %v261_v18  }
  0x2e   :  { %298 = vperm.xlu1 %343, %v295_v19   ;;  %274 = vperm.xlu2 %344, %v260_v44  }
  0x68   :  { %v137_v46 = vpop.permute.xlu2 %136 }
  0x70   :  { %v132_v48 = vpop.permute.xlu2 %131 }
  0x77   :  { %v63_v22 = vpop.permute.xlu0 %62 }
  0x78   :  { %v53_v24 = vpop.permute.xlu1 %52  ;;  %v196_v1 = vpop.permute.xlu2 %195 }
  0x7f   :  { %v58_v26 = vpop.permute.xlu0 %57 }
  0x80   :  { %v48_v33 = vpop.permute.xlu1 %47  ;;  %v211_v5 = vpop.permute.xlu2 %210 }
  0x85   :  { %v95_v20 = vpop.f32.mrf.mxu0 }
  0x86   :  { %v96_v34 = vadd.f32 %v95_v20, %v48_v33 }
  0x87   :  { %v127_v52 = vpop.permute.xlu0 %126 }
  0x88   :  { %v107_v37 = vmax.f32 %v96_v34, 0.0  ;;  %v122_v56 = vpop.permute.xlu1 %121  ;;  %v275_v17 = vpop.permute.xlu2 %274 }
  0x8d   :  { %v98_v21 = vpop.f32.mrf.mxu0 }
  0x8e   :  { %v99_v30 = vadd.f32 %v98_v21, %v53_v24 }
  0x8f   :  { %v201_v2 = vpop.permute.xlu0 %200 }
  0x90   :  { %v108_v36 = vmax.f32 %v99_v30, 0.0  ;;  %v206_v4 = vpop.permute.xlu1 %205 }
  0x95   :  { %v101_v23 = vpop.f32.mrf.mxu0 }
  0x96   :  { %v102_v28 = vadd.f32 %v101_v23, %v58_v26 }
  0x97   :  { %v265_v11 = vpop.permute.xlu0 %264 }
  0x98   :  { %v109_v35 = vmax.f32 %v102_v28, 0.0  ;;  %v270_v15 = vpop.permute.xlu1 %269 }
  0x9d   :  { %v104_v27 = vpop.f32.mrf.mxu0 }
  0x9e   :  { %v105_v29 = vadd.f32 %v104_v27, %v63_v22 }
  0x9f   :  { %v280_v24 = vpop.permute.xlu0 %279 }
  0xa0   :  { %v110_v31 = vmax.f32 %v105_v29, 0.0  ;;  %v299_v32 = vpop.permute.xlu1 %298 }
  0xa1   :  { %v301_v34 = vperm.slane %v299_v32, 0 }
  0xa2   :  { %164 = vmatpush.msra.mxu1 %v110_v31  ;;  %332 = vmatpush.msra.mxu3 %v110_v31 }
  0xa4   :  { %165 = vmatpush.msra.mxu1 %v109_v35  ;;  %333 = vmatpush.msra.mxu3 %v109_v35 }
  0xa6   :  { %166 = vmatpush.msra.mxu1 %v108_v36  ;;  %334 = vmatpush.msra.mxu3 %v108_v36 }
  0xa8   :  { %167 = vmatpush.msra.mxu1 %v107_v37  ;;  %335 = vmatpush.msra.mxu3 %v107_v37 }
  0xa9   :  { %324 = vmatmul.msk.f32.vlgmr.msra.gmra.mxu1 %vm139_vm1, %v111_v38  ;;  %325 = vmatmul.msk.f32.vlgmr.msra.gmra.mxu3 %vm139_vm1, %v112_v39 }
  0xb1   :  { %326 = vmatmul.msk.f32.gmra.mxu3 %vm139_vm1, %v113_v41 }
  0xb9   :  { %327 = vmatmul.msk.f32.gmra.mxu3 %vm139_vm1, %v114_v43 }
 0x126   :  { %v169_v53 = vpop.f32.mrf.mxu1 }
 0x127   :  { %v170_v57 = vadd.f32 %v169_v53, %v122_v56 }
 0x129   :  { %v181_v60 = vmax.f32 %v170_v57, 0.0 }
 0x12c   :  { %v172_v45 = vpop.f32.mrf.mxu3 }
 0x12d   :  { %v173_v54 = vadd.f32 %v172_v45, %v127_v52 }
 0x12f   :  { %v182_v59 = vmax.f32 %v173_v54, 0.0 }
 0x134   :  { %v175_v47 = vpop.f32.mrf.mxu3 }
 0x135   :  { %v176_v50 = vadd.f32 %v175_v47, %v132_v48 }
 0x137   :  { %v183_v58 = vmax.f32 %v176_v50, 0.0 }
 0x13c   :  { %v178_v49 = vpop.f32.mrf.mxu3 }
 0x13d   :  { %v179_v51 = vadd.f32 %v178_v49, %v137_v46 }
 0x13f   :  { %v184_v55 = vmax.f32 %v179_v51, 0.0 }
 0x141   :  { %237 = vmatpush.msrb.mxu1 %v184_v55  ;;  %336 = vmatpush.msra.mxu2 %v184_v55 }
 0x143   :  { %238 = vmatpush.msrb.mxu1 %v183_v58  ;;  %337 = vmatpush.msra.mxu2 %v183_v58 }
 0x145   :  { %239 = vmatpush.msrb.mxu1 %v182_v59  ;;  %338 = vmatpush.msra.mxu2 %v182_v59 }
 0x147   :  { %240 = vmatpush.msrb.mxu1 %v181_v60  ;;  %339 = vmatpush.msra.mxu2 %v181_v60 }
 0x148   :  { %328 = vmatmul.msk.f32.vlgmr.msrb.gmra.mxu1 %vm139_vm1, %v185_v61  ;;  %329 = vmatmul.msk.f32.vlgmr.msra.gmra.mxu2 %vm139_vm1, %v186_v62 }
 0x150   :  { %330 = vmatmul.msk.f32.gmra.mxu2 %vm139_vm1, %v187_v63 }
 0x158   :  { %331 = vmatmul.msk.f32.gmra.mxu2 %vm139_vm1, %v188_v0 }
 0x1c5   :  { %v242_v6 = vpop.f32.mrf.mxu1 }
 0x1c6   :  { %v243_v9 = vadd.f32 %v242_v6, %v196_v1 }
 0x1c8   :  { %v254_v13 = vmax.f32 %v243_v9, 0.0 }
 0x1ca   :  { %v282_v19 = vmul.f32 %v265_v11, %v254_v13 }
 0x1cb   :  { %v245_v3 = vpop.f32.mrf.mxu2 }
 0x1cc   :  { %v246_v7 = vadd.f32 %v245_v3, %v201_v2 }
 0x1ce   :  { %v255_v12 = vmax.f32 %v246_v7, 0.0 }
 0x1d0   :  { %v283_v16 = vmul.f32 %v270_v15, %v255_v12 }
 0x1d2   :  { %v286_v22 = vadd.f32 %v283_v16, %v282_v19 }
 0x1d3   :  { %v248_v8 = vpop.f32.mrf.mxu2 }
 0x1d4   :  { %v249_v10 = vadd.f32 %v248_v8, %v206_v4 }
 0x1d6   :  { %v256_v14 = vmax.f32 %v249_v10, 0.0 }
 0x1d8   :  { %v284_v20 = vmul.f32 %v275_v17, %v256_v14 }
 0x1da   :  { %v287_v25 = vadd.f32 %v286_v22, %v284_v20 }
 0x1db   :  { %v251_v18 = vpop.f32.mrf.mxu2 }
 0x1dc   :  { %v252_v21 = vadd.f32 %v251_v18, %v211_v5 }
 0x1de   :  { %v257_v23 = vmax.f32 %v252_v21, 0.0 }
 0x1e0   :  { %v285_v26 = vmul.f32 %v280_v24, %v257_v23 }
 0x1e2   :  { %v288_v27 = vadd.f32 %v287_v25, %v285_v26 }
 0x1e4   :  { %v289_v28 = vrot.slane %v288_v27, 4 }
 0x1e6   :  { %v290_v29 = vadd.f32 %v289_v28, %v288_v27 }
 0x1e8   :  { %v291_v30 = vrot.slane %v290_v29, 2 }
 0x1ea   :  { %v292_v31 = vadd.f32 %v291_v30, %v290_v29 }
 0x1ec   :  { %v293_v33 = vrot.slane %v292_v31, 1 }
 0x1ee   :  { %v294_v35 = vadd.f32 %v293_v33, %v292_v31 }
 0x1f0   :  { %v302_v36 = vadd.f32 %v301_v34, %v294_v35 }
 0x1f2   :  { %303 = vst [vmem:[#allocation3] sm:$0x1] %v302_v36 }
 0x1f3   :  { %314 = dma.vmem_to_hbm [thread:$0]  %s310_s18, 16, %s312_s1, [#allocation4]  }
 0x1f4   :  { %369 = dma.done.wait [#allocation4], 16  }
 0x1f5   :  { %370 = vsyncadd [#allocation4], 4294967280 }
 0x1f6   :  { %319 = vsyncpa [#allocation4], 1 }

</bundles_post_ra>
